<compile_context>
chip_gen: v5e
topology: v5e:2x2
jax: 0.10.0
libtpu: 0.0.40
codegen_flags: <defaults>
</compile_context>

<pallas_src>
import jax
import jax.numpy as jnp
from jax.experimental import pallas as pl
from jax.experimental.pallas import tpu as pltpu


def _sub_adder_kernel(x_ref, noise_ref, w_ref, b_ref, o_ref):
    # Linear: noise @ W^T, with W^T already laid out as (z_dim, x_dim) and
    # cast for the MXU.  Noise is cast in-register (VPU) -> no extra DMA.
    logits = jnp.dot(noise_ref[...].astype(w_ref.dtype), w_ref[...],
                     preferred_element_type=jnp.float32)
    logits = logits + b_ref[...]                       # (bm, x_dim) + (1, x_dim)
    # sigmoid(t) = 1 / (1 + exp(-t)); exp + approx reciprocal both run on the
    # EUP slot (VPU/VALU slots stay free for the elementwise epilogue).
    multiplier = pl.reciprocal(1.0 + jnp.exp(-logits), approx=True)
    o_ref[...] = (x_ref[...].astype(jnp.float32) * multiplier).astype(o_ref.dtype)


def sub_adder_prepare(weight, bias, *, mxu_dtype=jnp.bfloat16):
    """One-time parameter prep (keep OUT of the hot path).

    weight: (x_dim, z_dim) as in nn.Linear; bias: (x_dim,).
    Returns (w_t, bias2d): weight pre-transposed to (z_dim, x_dim) and cast
    for the MXU, bias reshaped to (1, x_dim) in f32.  No feature padding:
    the kernel handles arbitrary x_dim via full-extent last-dim blocks.
    """
    x_dim, z_dim = weight.shape
    assert bias.shape == (x_dim,)
    return weight.T.astype(mxu_dtype), bias.reshape(1, x_dim).astype(jnp.float32)


def _round_down(v, m):
    return max(m, (v // m) * m)


def _choose_bm(B, x_dim, z_dim, x_bytes, n_bytes, w_bytes, requested,
               vmem_budget_bytes):
    """Pick the batch-tile rows bm and report the VMEM footprint.

    Accounts for: 2x-buffered streamed x / noise / out tiles, the f32
    logits/multiplier intermediates, and the (default 2x-buffered) resident
    W^T and bias.  Sublane rounding is dtype-aware (8 rows f32, 16 bf16,
    32 int8/fp8).
    """
    sublane = max(32 // x_bytes, 32 // n_bytes, 8)

    resident = 2 * z_dim * x_dim * w_bytes + 2 * x_dim * 4        # W^T + bias
    per_row = (2 * x_dim * x_bytes          # x tile (double-buffered)
               + 2 * x_dim * x_bytes        # out tile (double-buffered)
               + 2 * z_dim * n_bytes        # noise tile (double-buffered)
               + 2 * x_dim * 4)             # f32 logits + multiplier
    avail = max(vmem_budget_bytes - resident - (1 << 20), per_row)
    cap = max(sublane, avail // per_row)

    bm = min(requested, B, cap)

    # Ensure the grid has >= 2 steps when B allows it, so v7x's two
    # TensorCores both get work (neutral on single-TC v5e/v6e: ~0.35 us/step).
    if B >= 2 * sublane:
        half = -(-B // 2)                              # cdiv(B, 2)
        half = -(-half // sublane) * sublane           # round up to sublane
        bm = min(bm, half)

    if bm < B:
        # MXU-/sublane-friendly rounding (free: the kernel is HBM-bound).
        if bm >= 512:
            bm = _round_down(bm, 256)
        elif bm >= 256:
            bm = _round_down(bm, 128)
        else:
            bm = _round_down(bm, sublane)

    footprint = resident + per_row * bm
    return bm, footprint


def sub_adder(x, noise, w_t, bias2d, *, bm=1024, vmem_budget_bytes=32 << 20):
    """x: (B, x_dim), noise: (B, z_dim); (w_t, bias2d) from sub_adder_prepare()."""
    B, x_dim = x.shape
    Bn, z_dim = noise.shape
    assert Bn == B
    assert w_t.shape == (z_dim, x_dim) and bias2d.shape == (1, x_dim)

    x_bytes = x.dtype.itemsize
    n_bytes = noise.dtype.itemsize
    w_bytes = w_t.dtype.itemsize

    bm, footprint = _choose_bm(B, x_dim, z_dim, x_bytes, n_bytes, w_bytes,
                               bm, vmem_budget_bytes)
    grid = (pl.cdiv(B, bm),)

    # Scoped-VMEM limit sized to the actual footprint (+25% & 2 MiB headroom
    # for compiler-internal scratch), clamped to a range that is valid on all
    # of v5e/v6e (128 MiB physical) and v7x (64 MiB physical per TC).
    vmem_limit = int(min(max(int(footprint * 1.25) + (2 << 20), 32 << 20),
                         64 << 20))

    bytes_accessed = (B * x_dim * (x_bytes + x.dtype.itemsize)   # x in + out
                      + B * z_dim * n_bytes                      # noise stream
                      + z_dim * x_dim * w_bytes                  # weight (once)
                      + x_dim * 4)                               # bias (once)
    cost = pl.CostEstimate(flops=2 * B * x_dim * z_dim,
                           transcendentals=B * x_dim,
                           bytes_accessed=bytes_accessed)

    return pl.pallas_call(
        _sub_adder_kernel,
        out_shape=jax.ShapeDtypeStruct((B, x_dim), x.dtype),
        grid_spec=pltpu.PrefetchScalarGridSpec(
            num_scalar_prefetch=0,
            grid=grid,
            in_specs=[
                # Streamed per-grid-step tiles (last dim = full x_dim/z_dim,
                # so no 128-padding of the arrays is required).
                pl.BlockSpec((bm, x_dim), lambda i: (i, 0)),     # x tile
                pl.BlockSpec((bm, z_dim), lambda i: (i, 0)),     # noise tile
                # Grid-invariant operands (constant index_map -> fetched once).
                pl.BlockSpec((z_dim, x_dim), lambda i: (0, 0)),  # W^T resident
                pl.BlockSpec((1, x_dim), lambda i: (0, 0)),      # bias resident
            ],
            out_specs=pl.BlockSpec((bm, x_dim), lambda i: (i, 0)),
        ),
        compiler_params=pltpu.CompilerParams(
            dimension_semantics=("parallel",),    # megacore sharding on v7x
            vmem_limit_bytes=vmem_limit,
        ),
        cost_estimate=cost,
    )(x, noise, w_t, bias2d)


def _reference(x, noise, weight, bias):
    return x * jax.nn.sigmoid(noise @ weight.T + bias)


if __name__ == "__main__":
    key = jax.random.PRNGKey(0)
    k1, k2, k3, k4 = jax.random.split(key, 4)

    B, x_dim, z_dim = 8, 32, 16

    x = jax.random.normal(k1, (B, x_dim), dtype=jnp.float32)
    noise = jax.random.normal(k2, (B, z_dim), dtype=jnp.float32)

    # Deterministic parameter init (mimics nn.Linear uniform(-1/sqrt(z), 1/sqrt(z)))
    bound = 1.0 / (z_dim ** 0.5)
    weight = jax.random.uniform(k3, (x_dim, z_dim), jnp.float32, -bound, bound)
    bias = jax.random.uniform(k4, (x_dim,), jnp.float32, -bound, bound)

    # One-time parameter prep (transpose / bf16 cast) outside the hot path.
    w_t, b2 = sub_adder_prepare(weight, bias)

    out = sub_adder(x, noise, w_t, b2)
    jax.block_until_ready(out)

    ref = _reference(x, noise, weight, bias)
    assert out.shape == (B, x_dim)
    # bf16 MXU inputs with f32 accumulation (+ approx-reciprocal sigmoid)
    # -> loose-ish tolerance vs the f32 reference.
    assert jnp.allclose(out, ref, atol=2e-2, rtol=2e-2), "mismatch vs reference"

    print("KERNEL_OK")
</pallas_src>

<mosaic_0001>
module attributes {stable_mosaic.version = 11 : i64} {
  func.func @_sub_adder_kernel(%arg0: i32, %arg1: memref<8x32xf32, #tpu.memory_space<vmem>>, %arg2: memref<8x16xf32, #tpu.memory_space<vmem>>, %arg3: memref<16x32xbf16, #tpu.memory_space<vmem>>, %arg4: memref<1x32xf32, #tpu.memory_space<vmem>>, %arg5: memref<8x32xf32, #tpu.memory_space<vmem>>) attributes {dimension_semantics = [#tpu.dimension_semantics<parallel>], iteration_bounds = array<i64: 1>, scalar_prefetch = 0 : i64, scratch_operands = 0 : i64, tpu.core_type = #tpu.core_type<tc>, window_params = [{transform_indices = @transform_0, window_bounds = array<i64: 8, 32>}, {transform_indices = @transform_1, window_bounds = array<i64: 8, 16>}, {pipeline_mode = #tpu.pipeline_mode<synchronous>, transform_indices = @transform_2, window_bounds = array<i64: 16, 32>}, {pipeline_mode = #tpu.pipeline_mode<synchronous>, transform_indices = @transform_3, window_bounds = array<i64: 1, 32>}, {transform_indices = @transform_4, window_bounds = array<i64: 8, 32>}]} {
    %c0 = arith.constant 0 : index
    %c0_0 = arith.constant 0 : index
    %0 = vector.load %arg2[%c0, %c0_0] : memref<8x16xf32, #tpu.memory_space<vmem>>, vector<8x16xf32>
    %1 = arith.truncf %0 : vector<8x16xf32> to vector<8x16xbf16>
    %c0_1 = arith.constant 0 : index
    %c0_2 = arith.constant 0 : index
    %2 = vector.load %arg3[%c0_1, %c0_2] : memref<16x32xbf16, #tpu.memory_space<vmem>>, vector<16x32xbf16>
    %cst = arith.constant dense<0.000000e+00> : vector<8x32xf32>
    %3 = tpu.matmul %1, %2, %cst {dimension_numbers = #tpu.dot_dimension_numbers<[1], [0], [0], [1], [0, 0, 1, 1], [], []>} : vector<8x16xbf16>, vector<16x32xbf16>, vector<8x32xf32> -> vector<8x32xf32>
    %c0_3 = arith.constant 0 : index
    %c0_4 = arith.constant 0 : index
    %4 = vector.load %arg4[%c0_3, %c0_4] : memref<1x32xf32, #tpu.memory_space<vmem>>, vector<1x32xf32>
    %5 = vector.broadcast %4 : vector<1x32xf32> to vector<8x32xf32>
    %6 = arith.addf %3, %5 : vector<8x32xf32>
    %cst_5 = arith.constant 0.000000e+00 : f32
    %7 = vector.broadcast %cst_5 : f32 to vector<8x32xf32>
    %8 = arith.subf %7, %6 : vector<8x32xf32>
    %9 = math.exp %8 : vector<8x32xf32>
    %cst_6 = arith.constant 1.000000e+00 : f32
    %10 = vector.broadcast %cst_6 : f32 to vector<8x32xf32>
    %11 = arith.addf %10, %9 : vector<8x32xf32>
    %12 = tpu.reciprocal %11 {approx = true} : vector<8x32xf32> -> vector<8x32xf32>
    %c0_7 = arith.constant 0 : index
    %c0_8 = arith.constant 0 : index
    %13 = vector.load %arg1[%c0_7, %c0_8] : memref<8x32xf32, #tpu.memory_space<vmem>>, vector<8x32xf32>
    %14 = arith.mulf %13, %12 : vector<8x32xf32>
    %c0_9 = arith.constant 0 : index
    %c0_10 = arith.constant 0 : index
    %15 = vector.load %arg5[%c0_9, %c0_10] : memref<8x32xf32, #tpu.memory_space<vmem>>, vector<8x32xf32>
    tpu.vector_store %arg5[%c0_9, %c0_10], %14 {strides = array<i32>} : memref<8x32xf32, #tpu.memory_space<vmem>>, vector<8x32xf32>,
    return
  }
  func.func @transform_0(%arg0: i32) -> (i32, i32) {
    %c0_i32 = arith.constant 0 : i32
    %c0_i32_0 = arith.constant 0 : i32
    return %arg0, %c0_i32 : i32, i32
  }
  func.func @transform_1(%arg0: i32) -> (i32, i32) {
    %c0_i32 = arith.constant 0 : i32
    %c0_i32_0 = arith.constant 0 : i32
    return %arg0, %c0_i32 : i32, i32
  }
  func.func @transform_2(%arg0: i32) -> (i32, i32) {
    %c0_i32 = arith.constant 0 : i32
    %c0_i32_0 = arith.constant 0 : i32
    %c0_i32_1 = arith.constant 0 : i32
    return %c0_i32, %c0_i32_0 : i32, i32
  }
  func.func @transform_3(%arg0: i32) -> (i32, i32) {
    %c0_i32 = arith.constant 0 : i32
    %c0_i32_0 = arith.constant 0 : i32
    %c0_i32_1 = arith.constant 0 : i32
    return %c0_i32, %c0_i32_0 : i32, i32
  }
  func.func @transform_4(%arg0: i32) -> (i32, i32) {
    %c0_i32 = arith.constant 0 : i32
    %c0_i32_0 = arith.constant 0 : i32
    return %arg0, %c0_i32 : i32, i32
  }
}

</mosaic_0001>

<bundles_post_ra>
// kernel: tpu_custom_call.1
= control target key start
LH: loop header
LB: loop body
LE: loop exit
PB: predicated region body
PF: predicated region fallthrough
CT: control target
= control target key end

     0   :  { %9 = vsyncpa [#allocation3], 0  ;;  %s285_s0 = inlined_call_operand.hbm [shape: f32[8,32], index: 0, kind: input, shape index: {}]   ;;  %s286_s1 = inlined_call_operand.hbm [shape: f32[8,16], index: 1, kind: input, shape index: {}]   ;;  %s287_s2 = inlined_call_operand.hbm [shape: bf16[16,32], index: 2, kind: input, shape index: {}]   ;;  %s288_s3 = inlined_call_operand.vmem [shape: f32[1,32], index: 3, kind: input, shape index: {}]   ;;  %s289_s4 = inlined_call_operand.hbm [shape: f32[8,32], index: 4, kind: output, shape index: {}]  }
   0x1   :  { %10 = vsyncpa [#allocation6], 0  ;;  %s28_s17 = sshll.u32 %s286_s1, 4  ;;  %s29_s17 = int_to_ptr.hbm [resolvable:$true] %s28_s17 }
   0x2   :  { %11 = vsyncpa [#allocation4], 0  ;;  %s239_s18 = smov [#allocation5]   ;;  %s17_s22 = sshll.u32 %s285_s0, 4  ;;  %s18_s22 = int_to_ptr.hbm [resolvable:$true] %s17_s22 }
   0x3   :  { %s30_s19 = sshll.u32 %s239_s18, 4  ;;  %s240_s23 = smov [#allocation2]   ;;  %s31_s19 = int_to_ptr.vmem [resolvable:$true] %s30_s19 }
   0x4   :  { %33 = dma.hbm_to_vmem [thread:$0]  %s29_s17, 128, %s31_s19, [#allocation6]  }
   0x5   :  { %s19_s24 = sshll.u32 %s240_s23, 4  ;;  %s38_s27 = sshll.u32 %s287_s2, 4  ;;  %s20_s24 = int_to_ptr.vmem [resolvable:$true] %s19_s24  ;;  %s39_s27 = int_to_ptr.hbm [resolvable:$true] %s38_s27 }
   0x6   :  { %22 = dma.hbm_to_vmem [thread:$0]  %s18_s22, 128, %s20_s24, [#allocation3]  }
   0x7   :  { %s241_s1 = smov [#allocation7]   ;;  %s242_s29 = smov 64  }
   0x8   :  { %s40_s28 = sshll.u32 %s241_s1, 4  ;;  %s243_s30 = smov 4   ;;  %s41_s28 = int_to_ptr.vmem [resolvable:$true] %s40_s28 }
   0x9   :  { %46 = dma.hbm_to_vmem [thread:$0]  %s39_s27, 128, %s41_s28, [#allocation6], %s242_s29, %s242_s29, %s243_s30  }
   0xa   :  { %233 = dma.done.wait [#allocation3], 128  }
   0xb   :  { %234 = vsyncadd [#allocation3], 4294967168 }
   0xc   :  { %235 = dma.done.wait [#allocation6], 256  }
   0xd   :  { %236 = vsyncadd [#allocation6], 4294967040  ;;  %v125_v0 = vld [vmem:[#allocation7] sm:$0xff]  ;;  %v62_v1 = vld [vmem:[#allocation5] sm:$0xff]  ;;  %vm76_vm0 = vcmask 130048   ;;  %s244_s5 = smov [#allocation8]  }
   0xe   :  { %v63_v2 = vpack.c.bf16 %v62_v1, %v62_v1  ;;  %87 = vmatpush.bf16.msra.mxu0 %v125_v0  ;;  %v132_v3 = vld [vmem:[%s288_s3] ss:$0 sm:$0xff]  ;;  %s107_s6 = sshll.u32 %s244_s5, 4  ;;  %s109_s9 = sshll.u32 %s289_s4, 4  ;;  %vm100_vm1 = vcmask 261120   ;;  %s108_s6 = int_to_ptr.vmem [resolvable:$true] %s107_s6  ;;  %s110_s9 = int_to_ptr.hbm [resolvable:$true] %s109_s9 }
   0xf   :  { %v98_v11 = vld [vmem:[#allocation2] sm:$0xff] }
  0x11   :  { %124 = vmatmul.msk.bf16.vlgmr.msra.gmra.mxu0 %vm76_vm0, %v63_v2 }
  0x8e   :  { %v89_v4 = vpop.f32.mrf.mxu0 }
  0x8f   :  { %v90_v5 = vadd.f32 %v132_v3, %v89_v4 }
  0x91   :  { %v93_v6 = vsub.f32 0.0, %v90_v5 }
  0x93   :  { %v94_v7 = vmul.f32 1.442695, %v93_v6 }
  0x95   :  { %133 = vpow2.f32 %v94_v7 }
  0x96   :  { %v91_v8 = vpop.f32.mrf.mxu0 }
  0x9b   :  { %v134_v9 = vpop.eup %133 }
  0x9c   :  { %v96_v10 = vadd.f32 1.0, %v134_v9 }
  0x9e   :  { %135 = vrcp.f32 %v96_v10 }
  0xa4   :  { %v136_v12 = vpop.eup %135 }
  0xa5   :  { %v99_v13 = vmul.f32 %v136_v12, %v98_v11 }
  0xa7   :  { %101 = vst.msk [vmem:[#allocation8] sm:$0xff] %vm100_vm1, %v99_v13 }
  0xa8   :  { %112 = dma.vmem_to_hbm [thread:$0]  %s108_s6, 128, %s110_s9, [#allocation4]  }
  0xa9   :  { %237 = dma.done.wait [#allocation4], 128  }
  0xaa   :  { %238 = vsyncadd [#allocation4], 4294967168 }
  0xab   :  { %117 = vsyncpa [#allocation3], 1 }
  0xac   :  { %118 = vsyncpa [#allocation6], 1 }
  0xad   :  { %119 = vsyncpa [#allocation4], 1 }

</bundles_post_ra>
